<compile_context>
chip_gen: v5e
topology: v5e:2x2
jax: 0.10.0
libtpu: 0.0.40
codegen_flags: <defaults>
</compile_context>

<pallas_src>
import functools

import jax
import jax.numpy as jnp
from jax.experimental import pallas as pl
from jax.experimental.pallas import tpu as pltpu

_TARGET_BLOCK_BYTES = 2 * 1024 * 1024  # ~2 MiB per grid step (f32-sized)


def _make_act_kernel(act: str):
    """Returns a Pallas kernel body computing the requested activation."""

    def kernel(beta_ref, x_ref, o_ref):
        # beta_ref: SMEM (1,) scalar parameter (used by swish / pmishact only)
        x = x_ref[...].astype(jnp.float32)

        if act == "relu":
            y = jnp.maximum(x, 0.0)
        elif act == "silu":
            y = x * jax.nn.sigmoid(x)
        elif act == "swish":
            beta = beta_ref[0]
            y = x * jax.nn.sigmoid(beta * x)
        elif act == "mish":
            # tanh(softplus(x)) == ((1+e^x)^2 - 1) / ((1+e^x)^2 + 1)
            # -> single EUP exp + one divide instead of exp + log1p + tanh.
            # Clamp x at 20: for x >= 20 the ratio rounds to 1.0 in f32 and e**2
            # stays finite, so the fused form is exact and overflow-free.
            e = jnp.exp(jnp.minimum(x, 20.0))
            num = e * (e + 2.0)
            y = x * (num / (num + 2.0))
        elif act == "pmishact":
            beta = beta_ref[0]
            inv_beta = 1.0 / beta  # scalar reciprocal, hoisted off the vector path
            y = x * jnp.tanh(jax.nn.softplus(beta * x) * inv_beta)
        else:
            raise NotImplementedError(f"No activation function found for {act}")

        o_ref[...] = y.astype(o_ref.dtype)

    return kernel


def _choose_layout(n: int):
    """Pick a lane-dense (rows_padded, cols) view and a row-block size."""
    # Widest lane width (multiple of 128, <= 1024) that divides n exactly, so
    # typical conv activation sizes need no padding at all.
    cols = 128
    for c in (1024, 512, 384, 256, 128):
        if n % c == 0:
            cols = c
            break
    rows = pl.cdiv(n, cols)

    # ~2 MiB (f32-sized) per block; multiple of 8 sublanes.
    max_rows = max(8, (_TARGET_BLOCK_BYTES // (4 * cols)) // 8 * 8)

    if rows <= max_rows:
        block_rows = rows  # single row-block == full dim (no 8-divisibility needed)
    else:
        block_rows = max_rows
        # Prefer a multiple-of-8 divisor of `rows` so the slab needs no padding.
        for cand in range(max_rows, 63, -8):
            if rows % cand == 0:
                block_rows = cand
                break

    rows_padded = pl.cdiv(rows, block_rows) * block_rows
    return rows_padded, cols, block_rows


@functools.partial(jax.jit, static_argnames=("act",))
def activation_forward(x, beta, *, act: str):
    """Applies the activation elementwise via a Pallas TPU kernel.

    x:    any-shaped float array (e.g. NCHW conv activations)
    beta: shape (1,) learnable parameter (used by 'swish' / 'pmishact')
    """
    orig_shape = x.shape
    orig_dtype = x.dtype
    n = x.size

    beta = beta.astype(jnp.float32).reshape((1,))

    rows_padded, cols, block_rows = _choose_layout(n)
    n_padded = rows_padded * cols

    x_flat = x.reshape(-1)
    if n_padded != n:
        # Fallback for awkward sizes; zero padding is numerically safe for all
        # five activations and the padded outputs are sliced off below.
        x_flat = jnp.pad(x_flat, (0, n_padded - n))
    x2d = x_flat.reshape(rows_padded, cols)

    grid = (rows_padded // block_rows,)

    out2d = pl.pallas_call(
        _make_act_kernel(act),
        out_shape=jax.ShapeDtypeStruct((rows_padded, cols), orig_dtype),
        grid=grid,
        in_specs=[
            pl.BlockSpec(memory_space=pltpu.MemorySpace.SMEM),   # beta scalar
            pl.BlockSpec((block_rows, cols), lambda i: (i, 0)),  # x block
        ],
        out_specs=pl.BlockSpec((block_rows, cols), lambda i: (i, 0)),
        compiler_params=pltpu.CompilerParams(
            dimension_semantics=("parallel",),  # lets v7x shard blocks across 2 TCs
        ),
    )(beta, x2d)

    out_flat = out2d.reshape(-1)
    if n_padded != n:
        out_flat = out_flat[:n]
    return out_flat.reshape(orig_shape)


def _reference(x, beta, act):
    x32 = x.astype(jnp.float32)
    b = beta[0]
    if act == "relu":
        y = jnp.maximum(x32, 0.0)
    elif act == "silu":
        y = x32 * jax.nn.sigmoid(x32)
    elif act == "swish":
        y = x32 * jax.nn.sigmoid(b * x32)
    elif act == "mish":
        y = x32 * jnp.tanh(jax.nn.softplus(x32))
    elif act == "pmishact":
        y = x32 * jnp.tanh(jax.nn.softplus(b * x32) / b)
    return y.astype(x.dtype)


if __name__ == "__main__":
    key = jax.random.PRNGKey(0)
    beta = jnp.ones((1,), dtype=jnp.float32)  # matches nn.Parameter(torch.ones(1))

    ok = True

    # Primary: small NCHW conv-style activation tensor (single-block path).
    x = jax.random.normal(key, (2, 4, 16, 16), dtype=jnp.float32)
    for act in ("relu", "silu", "swish", "mish", "pmishact"):
        out = activation_forward(x, beta, act=act)
        jax.block_until_ready(out)
        ref = _reference(x, beta, act)
        if out.shape != x.shape or not jnp.allclose(out, ref, atol=1e-5, rtol=1e-5):
            ok = False
            print(f"MISMATCH in activation '{act}' for shape {x.shape}")

    # Secondary: multi-block path (grid > 1) and the non-128-divisible pad fallback.
    key2, key3 = jax.random.split(key)
    extra_cases = [
        jax.random.normal(key2, (4, 64, 64, 64), dtype=jnp.float32),  # grid=(2,)
        jax.random.normal(key3, (3, 5, 7, 11), dtype=jnp.float32),    # pad fallback
    ]
    for xt in extra_cases:
        for act in ("mish", "pmishact"):
            out = activation_forward(xt, beta, act=act)
            jax.block_until_ready(out)
            ref = _reference(xt, beta, act)
            if out.shape != xt.shape or not jnp.allclose(out, ref, atol=1e-5, rtol=1e-5):
                ok = False
                print(f"MISMATCH in activation '{act}' for shape {xt.shape}")

    if ok:
        print("KERNEL_OK")
</pallas_src>

<mosaic_0001>
module attributes {stable_mosaic.version = 11 : i64} {
  func.func @kernel(%arg0: i32, %arg1: memref<1xf32, #tpu.memory_space<smem>>, %arg2: memref<2x1024xf32, #tpu.memory_space<vmem>>, %arg3: memref<2x1024xf32, #tpu.memory_space<vmem>>) attributes {dimension_semantics = [#tpu.dimension_semantics<parallel>], iteration_bounds = array<i64: 1>, scalar_prefetch = 0 : i64, scratch_operands = 0 : i64, tpu.core_type = #tpu.core_type<tc>, window_params = [{transform_indices = @transform_0, window_bounds = array<i64: 1>}, {transform_indices = @transform_1, window_bounds = array<i64: 2, 1024>}, {transform_indices = @transform_2, window_bounds = array<i64: 2, 1024>}]} {
    %c0 = arith.constant 0 : index
    %c0_0 = arith.constant 0 : index
    %0 = vector.load %arg2[%c0, %c0_0] : memref<2x1024xf32, #tpu.memory_space<vmem>>, vector<2x1024xf32>
    %cst = arith.constant 0.000000e+00 : f32
    %1 = vector.broadcast %cst : f32 to vector<2x1024xf32>
    %2 = arith.maximumf %0, %1 : vector<2x1024xf32>
    %c0_1 = arith.constant 0 : index
    %c0_2 = arith.constant 0 : index
    %3 = vector.load %arg3[%c0_1, %c0_2] : memref<2x1024xf32, #tpu.memory_space<vmem>>, vector<2x1024xf32>
    tpu.vector_store %arg3[%c0_1, %c0_2], %2 {strides = array<i32>} : memref<2x1024xf32, #tpu.memory_space<vmem>>, vector<2x1024xf32>,
    return
  }
  func.func @transform_0(%arg0: i32) -> i32 {
    %c0_i32 = arith.constant 0 : i32
    %c0_i32_0 = arith.constant 0 : i32
    return %c0_i32 : i32
  }
  func.func @transform_1(%arg0: i32) -> (i32, i32) {
    %c0_i32 = arith.constant 0 : i32
    %c0_i32_0 = arith.constant 0 : i32
    return %arg0, %c0_i32 : i32, i32
  }
  func.func @transform_2(%arg0: i32) -> (i32, i32) {
    %c0_i32 = arith.constant 0 : i32
    %c0_i32_0 = arith.constant 0 : i32
    return %arg0, %c0_i32 : i32, i32
  }
}

</mosaic_0001>

<bundles_post_ra>
// kernel: activation_forward.1
= control target key start
LH: loop header
LB: loop body
LE: loop exit
PB: predicated region body
PF: predicated region fallthrough
CT: control target
= control target key end

     0   :  { %s49_s0 = inlined_call_operand.<no memory space> [shape: f32[1], index: 0, kind: input, shape index: {}]   ;;  %s50_s1 = inlined_call_operand.vmem [shape: f32[2,1024], index: 1, kind: input, shape index: {}]   ;;  %s51_s2 = inlined_call_operand.vmem [shape: f32[2,1024], index: 2, kind: output, shape index: {}]  }
   0x1   :  { %v12_v0 = vld [vmem:[%s50_s1] sm:$0xff]  ;;  %v13_v1 = vld [vmem:[%s50_s1 + $0x8] sm:$0xff] }
   0x2   :  { %v14_v2 = vmax.f32 %v12_v0, 0.0  ;;  %v15_v3 = vmax.f32 %v13_v1, 0.0 }
   0x4   :  { %16 = vst [vmem:[%s51_s2] sm:$0xff] %v14_v2 }
   0x5   :  { %17 = vst [vmem:[%s51_s2 + $0x8] sm:$0xff] %v15_v3 }

</bundles_post_ra>
